<compile_context>
chip_gen: v6e
topology: v6e:2x2x1
jax: 0.10.0
libtpu: 0.0.40
codegen_flags: <defaults>
</compile_context>

<pallas_src>
import functools
import math

import jax
import jax.numpy as jnp
from jax import lax
from jax.experimental import pallas as pl
from jax.experimental.pallas import tpu as pltpu


def _round_up(x, m):
    return (x + m - 1) // m * m


def _tpu_generation():
    """Best-effort TPU generation (5, 6, 7, ...) from the local device kind."""
    try:
        kind = jax.devices()[0].device_kind.lower()
    except Exception:
        return 6
    for gen in (7, 6, 5, 4, 3):
        if f"v{gen}" in kind:
            return gen
    return 6


def _vmem_capacity_bytes(gen):
    try:
        cap = int(getattr(pltpu.get_tpu_info(), "vmem_capacity_bytes", 0))
        if cap > 0:
            return cap
    except Exception:
        pass
    return (64 << 20) if gen >= 7 else (128 << 20)


def _chip_vmem_plan(gen):
    cap = _vmem_capacity_bytes(gen)
    if cap <= (64 << 20):
        # v7x-class: only 64 MiB physical per TensorCore -> stay well inside it.
        return {"vmem_limit": 48 << 20, "tile_budget": 40 << 20, "target_rows": 1024}
    # 128 MiB chips (v5e / v6e): bigger tiles amortize the ~0.35us/step pipeline overhead
    # and keep the DMA engine near the HBM roofline (v5e benefits most -> larger target).
    return {"vmem_limit": 96 << 20, "tile_budget": 64 << 20,
            "target_rows": 2048 if gen <= 5 else 1024}


def _choose_block_b(B, T_pad, D_pad, stream_itemsize, *, resident_bytes,
                    vmem_budget_bytes, target_rows):
    """Largest batch tile whose full pipeline footprint (double-buffered stream tile,
    f32 intermediates, hbias/output rows) fits the budget left after the resident
    We^T / v buffers, capped so block_b*T_pad stays near the MXU/DMA-friendly target."""
    t_lanes = _round_up(T_pad, 128)
    per_b = (
        2 * T_pad * D_pad * stream_itemsize   # double-buffered encoder / enc_proj tile
        + 2 * T_pad * D_pad * 4               # f32 intermediates (projection + energy)
        + 2 * D_pad * 4                       # double-buffered hbias row (f32)
        + 2 * t_lanes * 4                     # double-buffered output row (f32, lane-padded)
    )
    avail = max(vmem_budget_bytes - resident_bytes, per_b)
    cap_vmem = max(1, avail // per_b)
    cap_rows = max(1, target_rows // max(T_pad, 1))
    return int(max(1, min(B, cap_vmem, cap_rows)))


# ---------------------------------------------------------------------------- kernels


def _attend_and_store(pre_f32, v_row, o_ref, *, t_valid, energy_dtype):
    """tanh -> v-dot -> masked, numerically-stable softmax; writes (block_b, T_pad)."""
    tb, t, d = pre_f32.shape
    # EUP transcendental; bf16 on v6e/v7x doubles throughput, f32 on v5e.
    energy = jnp.tanh(pre_f32.astype(energy_dtype)).astype(jnp.float32)
    # scores = v . energy : VPU multiply + XLU lane reduction (no degenerate (1,T) matmul).
    scores = jnp.sum(energy * v_row.reshape(1, 1, d), axis=-1)            # (TB, T_pad)
    if t_valid < t:  # static: mask T padding before the softmax
        col = lax.broadcasted_iota(jnp.int32, (tb, t), 1)
        scores = jnp.where(col < t_valid, scores, -1e30)
    m = jnp.max(scores, axis=-1, keepdims=True)
    p = jnp.exp(scores - m)
    attn = p / jnp.sum(p, axis=-1, keepdims=True)   # exact divide: rows sum to 1
    o_ref[0] = attn.astype(o_ref.dtype)


def _bahdanau_proj_kernel(hbias_ref, enc_ref, we_t_ref, v_ref, o_ref, *,
                          t_valid, energy_dtype):
    # hbias_ref: (1, TB, Dp) f32      -- hidden @ Wh^T + b (precomputed in the wrapper)
    # enc_ref:   (TB, Tp, Dp) stream  -- encoder outputs (bf16 by default)
    # we_t_ref:  (Dp, Dp)    stream   -- We^T (pre-transposed, resident, single-buffered)
    # v_ref:     (1, Dp) f32
    # o_ref:     (1, TB, Tp) f32      -- attention weights (sublane-dense block)
    tb, t, d = enc_ref.shape
    # One wide MXU matmul: (TB*Tp, Dp) @ (Dp, Dp), f32 accumulation.  The reshape is
    # layout-free because Tp % 8 == 0 and Dp % 128 == 0 (the wrapper pads).
    e_flat = enc_ref[...].reshape(tb * t, d)
    e_proj = jnp.dot(e_flat, we_t_ref[...], preferred_element_type=jnp.float32)
    pre = e_proj.reshape(tb, t, d) + hbias_ref[0][:, None, :]
    _attend_and_store(pre, v_ref[...], o_ref, t_valid=t_valid, energy_dtype=energy_dtype)


def _bahdanau_precomp_kernel(hbias_ref, eproj_ref, v_ref, o_ref, *, t_valid, energy_dtype):
    # Decode-loop path: encoder projection cached outside -> no matmul, no We^T in VMEM.
    pre = eproj_ref[...].astype(jnp.float32) + hbias_ref[0][:, None, :]
    _attend_and_store(pre, v_ref[...], o_ref, t_valid=t_valid, energy_dtype=energy_dtype)


# ---------------------------------------------------------------------------- wrapper


def precompute_encoder_projection(encoder_outputs, W, *, dtype=jnp.bfloat16):
    """Decode-step-invariant half of the score: encoder_outputs @ We^T.
    Compute once per source sequence, pass to bahdanau_attention(enc_proj=...)."""
    D = encoder_outputs.shape[-1]
    We = W[:, D:]
    proj = encoder_outputs.astype(jnp.float32) @ We.astype(jnp.float32).T
    return proj.astype(dtype)


def bahdanau_attention(hidden, encoder_outputs, W, b, v, *,
                       enc_proj=None, block_b=None,
                       stream_dtype=jnp.bfloat16, energy_dtype=None):
    """hidden: (B, D); encoder_outputs: (B, T, D); W: (D, 2D); b: (D,); v: (D,)
    -> (B, 1, T) softmax attention weights (PyTorch forward with src_len=None)."""
    B, T, D = encoder_outputs.shape
    out_dtype = hidden.dtype
    gen = _tpu_generation()
    plan = _chip_vmem_plan(gen)

    if energy_dtype is None:
        # bf16 tanh doubles EUP throughput on v6e/v7x; v5e has no bf16 VPU/EUP.
        energy_dtype = jnp.bfloat16 if gen >= 6 else jnp.float32

    D_pad = _round_up(D, 128)
    T_pad = _round_up(T, 8)

    # Split the concat linear: concat([H, enc]) @ W^T + b == H @ Wh^T + enc @ We^T + b.
    Wh = W[:, :D]
    We = W[:, D:]

    # Hoisted hidden projection: one tiny (B, D) @ (D, D) XLA matmul in f32.
    hbias = hidden.astype(jnp.float32) @ Wh.astype(jnp.float32).T + b.astype(jnp.float32)

    if enc_proj is None:
        # Stream raw encoder outputs in bf16: halves the dominant HBM read, full-rate MXU.
        # (Decode loops should pass bf16 / pre-padded encoder outputs -- or enc_proj --
        #  so this cast/pad happens once per sequence, not once per step.)
        stream = encoder_outputs.astype(stream_dtype)
    else:
        stream = enc_proj          # keep the cached dtype; do not re-cast per call
    stream_itemsize = jnp.dtype(stream.dtype).itemsize

    resident = 8 * D_pad * 4                          # v (single-buffered, sublane-padded)
    if enc_proj is None:
        resident += D_pad * D_pad * stream_itemsize   # We^T (single-buffered)

    if block_b is None:
        block_b = _choose_block_b(B, T_pad, D_pad, stream_itemsize,
                                  resident_bytes=resident,
                                  vmem_budget_bytes=plan["tile_budget"],
                                  target_rows=plan["target_rows"])
    # v7x has 2 TensorCores: make sure the "parallel" batch axis has >= 2 grid steps.
    min_grid = 2 if (gen >= 7 and B >= 2) else 1
    num_blocks = max(min_grid, pl.cdiv(B, block_b))
    block_b = pl.cdiv(B, num_blocks)                  # rebalance; no divisor-of-B needed
    B_pad = num_blocks * block_b

    # Pad to lane/sublane-friendly shapes; padded T columns are masked in-kernel,
    # padded D columns are exact zeros, padded batch rows are sliced off below.
    stream_p = jnp.pad(stream, ((0, B_pad - B), (0, T_pad - T), (0, D_pad - D)))
    hbias_p = jnp.pad(hbias, ((0, B_pad - B), (0, D_pad - D)))
    hbias_p = hbias_p.reshape(num_blocks, block_b, D_pad)
    v_row = jnp.zeros((1, D_pad), jnp.float32).at[0, :D].set(v.astype(jnp.float32))

    We_T = None
    if enc_proj is None:
        We_T = jnp.zeros((D_pad, D_pad), stream_p.dtype)
        We_T = We_T.at[:D, :D].set(We.T.astype(stream_p.dtype))

    grid = (num_blocks,)
    hbias_spec = pl.BlockSpec((1, block_b, D_pad), lambda i: (i, 0, 0))
    stream_spec = pl.BlockSpec((block_b, T_pad, D_pad), lambda i: (i, 0, 0))
    out_spec = pl.BlockSpec((1, block_b, T_pad), lambda i: (i, 0, 0))
    out_shape = jax.ShapeDtypeStruct((num_blocks, block_b, T_pad), jnp.float32)
    cparams = pltpu.CompilerParams(
        dimension_semantics=("parallel",),
        vmem_limit_bytes=plan["vmem_limit"],
    )

    def _run(resident_mode):
        def _resident_spec(shape):
            kwargs = {} if resident_mode is None else {"pipeline_mode": resident_mode}
            return pl.BlockSpec(shape, lambda i: (0,) * len(shape), **kwargs)

        v_spec = _resident_spec((1, D_pad))
        if enc_proj is None:
            we_spec = _resident_spec((D_pad, D_pad))
            in_specs = [hbias_spec, stream_spec, we_spec, v_spec]
            operands = (hbias_p, stream_p, We_T, v_row)
            kernel = functools.partial(_bahdanau_proj_kernel,
                                       t_valid=T, energy_dtype=energy_dtype)
        else:
            in_specs = [hbias_spec, stream_spec, v_spec]
            operands = (hbias_p, stream_p, v_row)
            kernel = functools.partial(_bahdanau_precomp_kernel,
                                       t_valid=T, energy_dtype=energy_dtype)
        return pl.pallas_call(
            kernel,
            out_shape=out_shape,
            grid_spec=pltpu.PrefetchScalarGridSpec(
                num_scalar_prefetch=0,
                grid=grid,
                in_specs=in_specs,
                out_specs=out_spec,
            ),
            compiler_params=cparams,
        )(*operands)

    try:
        # Constant-index-map operands (We^T, v) are fetched once -> single-buffer them
        # to free VMEM for a larger encoder tile (most valuable on v7x's 64 MiB).
        out = _run(pl.Buffered(buffer_count=1))
    except Exception:
        out = _run(None)   # fallback: default double buffering (slightly more VMEM)

    out = out.reshape(B_pad, T_pad)[:B, :T]
    return out[:, None, :].astype(out_dtype)


def bahdanau_attention_ref(hidden, encoder_outputs, W, b, v):
    """Pure-JAX f32 reference mirroring the PyTorch forward (src_len=None)."""
    B, T, D = encoder_outputs.shape
    H = jnp.broadcast_to(hidden[:, None, :], (B, T, D)).astype(jnp.float32)
    cat = jnp.concatenate([H, encoder_outputs.astype(jnp.float32)], axis=2)   # (B, T, 2D)
    energy = jnp.tanh(cat @ W.astype(jnp.float32).T + b.astype(jnp.float32))  # (B, T, D)
    scores = jnp.einsum("d,btd->bt", v.astype(jnp.float32), energy)           # (B, T)
    attn = jax.nn.softmax(scores, axis=1)
    return attn[:, None, :]                                                    # (B, 1, T)


if __name__ == "__main__":
    B, T, D = 2, 8, 32  # batch, max_len (seq), dim

    key = jax.random.PRNGKey(0)
    k1, k2, k3, k4, k5 = jax.random.split(key, 5)

    hidden = jax.random.normal(k1, (B, D), dtype=jnp.float32)
    encoder_outputs = jax.random.normal(k2, (B, T, D), dtype=jnp.float32)

    # Deterministic parameter init (shapes from the module's __init__):
    #   linear_out: nn.Linear(2*dim, dim) -> W (D, 2D), b (D,)
    #   v: nn.Parameter(dim,) ~ Normal(0, 1/sqrt(dim))
    stdv_lin = 1.0 / math.sqrt(2 * D)
    W = jax.random.uniform(k3, (D, 2 * D), jnp.float32, -stdv_lin, stdv_lin)
    b = jax.random.uniform(k4, (D,), jnp.float32, -stdv_lin, stdv_lin)
    v = jax.random.normal(k5, (D,), dtype=jnp.float32) * (1.0 / math.sqrt(D))

    expected = bahdanau_attention_ref(hidden, encoder_outputs, W, b, v)

    # Path 1: default (in-kernel encoder projection, bf16 streaming, f32 accumulation).
    out = jax.block_until_ready(bahdanau_attention(hidden, encoder_outputs, W, b, v))
    assert out.shape == (B, 1, T), out.shape
    err = float(jnp.max(jnp.abs(out.astype(jnp.float32) - expected)))
    # Tolerance reflects intentional bf16 streaming / bf16 tanh on v6e/v7x.
    assert jnp.allclose(out.astype(jnp.float32), expected, atol=2e-2, rtol=2e-2), \
        f"proj-path mismatch vs reference: {err}"

    # Path 2: decode-loop path with the encoder projection cached outside the kernel.
    enc_proj = precompute_encoder_projection(encoder_outputs, W)
    out2 = jax.block_until_ready(
        bahdanau_attention(hidden, encoder_outputs, W, b, v, enc_proj=enc_proj))
    assert out2.shape == (B, 1, T), out2.shape
    err2 = float(jnp.max(jnp.abs(out2.astype(jnp.float32) - expected)))
    assert jnp.allclose(out2.astype(jnp.float32), expected, atol=2e-2, rtol=2e-2), \
        f"precomp-path mismatch vs reference: {err2}"

    print("KERNEL_OK")
</pallas_src>

<mosaic_0001>
module attributes {stable_mosaic.version = 11 : i64} {
  func.func @_bahdanau_proj_kernel(%arg0: i32, %arg1: memref<1x2x128xf32, #tpu.memory_space<vmem>>, %arg2: memref<2x8x128xbf16, #tpu.memory_space<vmem>>, %arg3: memref<128x128xbf16, #tpu.memory_space<vmem>>, %arg4: memref<1x128xf32, #tpu.memory_space<vmem>>, %arg5: memref<1x2x8xf32, #tpu.memory_space<vmem>>) attributes {dimension_semantics = [#tpu.dimension_semantics<parallel>], iteration_bounds = array<i64: 1>, scalar_prefetch = 0 : i64, scratch_operands = 0 : i64, tpu.core_type = #tpu.core_type<tc>, window_params = [{transform_indices = @transform_0, window_bounds = array<i64: 1, 2, 128>}, {transform_indices = @transform_1, window_bounds = array<i64: 2, 8, 128>}, {pipeline_mode = #tpu.pipeline_mode<synchronous>, transform_indices = @transform_2, window_bounds = array<i64: 128, 128>}, {pipeline_mode = #tpu.pipeline_mode<synchronous>, transform_indices = @transform_3, window_bounds = array<i64: 1, 128>}, {transform_indices = @transform_4, window_bounds = array<i64: 1, 2, 8>}]} {
    %c0 = arith.constant 0 : index
    %c0_0 = arith.constant 0 : index
    %c0_1 = arith.constant 0 : index
    %0 = vector.load %arg2[%c0, %c0_0, %c0_1] : memref<2x8x128xbf16, #tpu.memory_space<vmem>>, vector<2x8x128xbf16>
    %1 = vector.shape_cast %0 : vector<2x8x128xbf16> to vector<16x128xbf16>
    %c0_2 = arith.constant 0 : index
    %c0_3 = arith.constant 0 : index
    %2 = vector.load %arg3[%c0_2, %c0_3] : memref<128x128xbf16, #tpu.memory_space<vmem>>, vector<128x128xbf16>
    %cst = arith.constant dense<0.000000e+00> : vector<16x128xf32>
    %3 = tpu.matmul %1, %2, %cst {dimension_numbers = #tpu.dot_dimension_numbers<[1], [0], [0], [1], [0, 0, 1, 1], [], []>} : vector<16x128xbf16>, vector<128x128xbf16>, vector<16x128xf32> -> vector<16x128xf32>
    %4 = vector.shape_cast %3 : vector<16x128xf32> to vector<2x8x128xf32>
    %c0_4 = arith.constant 0 : index
    %c0_5 = arith.constant 0 : index
    %c0_6 = arith.constant 0 : index
    %5 = vector.load %arg1[%c0_4, %c0_5, %c0_6] : memref<1x2x128xf32, #tpu.memory_space<vmem>>, vector<1x2x128xf32>
    %6 = vector.shape_cast %5 : vector<1x2x128xf32> to vector<2x128xf32>
    %7 = vector.shape_cast %6 : vector<2x128xf32> to vector<2x1x128xf32>
    %8 = vector.broadcast %7 : vector<2x1x128xf32> to vector<2x8x128xf32>
    %9 = arith.addf %4, %8 : vector<2x8x128xf32>
    %c0_7 = arith.constant 0 : index
    %c0_8 = arith.constant 0 : index
    %10 = vector.load %arg4[%c0_7, %c0_8] : memref<1x128xf32, #tpu.memory_space<vmem>>, vector<1x128xf32>
    %11 = arith.truncf %9 : vector<2x8x128xf32> to vector<2x8x128xbf16>
    %12 = math.tanh %11 : vector<2x8x128xbf16>
    %13 = arith.extf %12 : vector<2x8x128xbf16> to vector<2x8x128xf32>
    %14 = vector.shape_cast %10 : vector<1x128xf32> to vector<1x1x128xf32>
    %15 = vector.broadcast %14 : vector<1x1x128xf32> to vector<2x8x128xf32>
    %16 = arith.mulf %13, %15 : vector<2x8x128xf32>
    %cst_9 = arith.constant dense<0.000000e+00> : vector<2x8xf32>
    %17 = vector.multi_reduction <add>, %16, %cst_9 [2] : vector<2x8x128xf32> to vector<2x8xf32>
    %cst_10 = arith.constant dense<0xFF800000> : vector<2xf32>
    %18 = vector.multi_reduction <maximumf>, %17, %cst_10 [1] : vector<2x8xf32> to vector<2xf32>
    %19 = vector.shape_cast %18 : vector<2xf32> to vector<2x1xf32>
    %20 = vector.broadcast %19 : vector<2x1xf32> to vector<2x8xf32>
    %21 = arith.subf %17, %20 : vector<2x8xf32>
    %22 = math.exp %21 : vector<2x8xf32>
    %cst_11 = arith.constant dense<0.000000e+00> : vector<2xf32>
    %23 = vector.multi_reduction <add>, %22, %cst_11 [1] : vector<2x8xf32> to vector<2xf32>
    %24 = vector.shape_cast %23 : vector<2xf32> to vector<2x1xf32>
    %25 = vector.broadcast %24 : vector<2x1xf32> to vector<2x8xf32>
    %26 = arith.divf %22, %25 : vector<2x8xf32>
    %c0_12 = arith.constant 0 : index
    %c0_13 = arith.constant 0 : index
    %c0_14 = arith.constant 0 : index
    %27 = vector.load %arg5[%c0_12, %c0_13, %c0_14] : memref<1x2x8xf32, #tpu.memory_space<vmem>>, vector<1x2x8xf32>
    %28 = vector.shape_cast %27 : vector<1x2x8xf32> to vector<2x8xf32>
    %29 = vector.shape_cast %26 : vector<2x8xf32> to vector<1x2x8xf32>
    tpu.vector_store %arg5[%c0_12, %c0_13, %c0_14], %29 {strides = array<i32>} : memref<1x2x8xf32, #tpu.memory_space<vmem>>, vector<1x2x8xf32>,
    return
  }
  func.func @transform_0(%arg0: i32) -> (i32, i32, i32) {
    %c0_i32 = arith.constant 0 : i32
    %c0_i32_0 = arith.constant 0 : i32
    %c0_i32_1 = arith.constant 0 : i32
    return %arg0, %c0_i32, %c0_i32_0 : i32, i32, i32
  }
  func.func @transform_1(%arg0: i32) -> (i32, i32, i32) {
    %c0_i32 = arith.constant 0 : i32
    %c0_i32_0 = arith.constant 0 : i32
    %c0_i32_1 = arith.constant 0 : i32
    return %arg0, %c0_i32, %c0_i32_0 : i32, i32, i32
  }
  func.func @transform_2(%arg0: i32) -> (i32, i32) {
    %c0_i32 = arith.constant 0 : i32
    %c0_i32_0 = arith.constant 0 : i32
    %c0_i32_1 = arith.constant 0 : i32
    return %c0_i32, %c0_i32_0 : i32, i32
  }
  func.func @transform_3(%arg0: i32) -> (i32, i32) {
    %c0_i32 = arith.constant 0 : i32
    %c0_i32_0 = arith.constant 0 : i32
    %c0_i32_1 = arith.constant 0 : i32
    return %c0_i32, %c0_i32_0 : i32, i32
  }
  func.func @transform_4(%arg0: i32) -> (i32, i32, i32) {
    %c0_i32 = arith.constant 0 : i32
    %c0_i32_0 = arith.constant 0 : i32
    %c0_i32_1 = arith.constant 0 : i32
    return %arg0, %c0_i32, %c0_i32_0 : i32, i32, i32
  }
}

module attributes {stable_mosaic.version = 11 : i64} {
  func.func @_bahdanau_proj_kernel(%arg0: i32, %arg1: memref<1x2x128xf32, #tpu.memory_space<vmem>>, %arg2: memref<2x8x128xbf16, #tpu.memory_space<vmem>>, %arg3: memref<128x128xbf16, #tpu.memory_space<vmem>>, %arg4: memref<1x128xf32, #tpu.memory_space<vmem>>, %arg5: memref<1x2x8xf32, #tpu.memory_space<vmem>>) attributes {dimension_semantics = [#tpu.dimension_semantics<parallel>], iteration_bounds = array<i64: 1>, scalar_prefetch = 0 : i64, scratch_operands = 0 : i64, tpu.core_type = #tpu.core_type<tc>, window_params = [{transform_indices = @transform_0, window_bounds = array<i64: 1, 2, 128>}, {transform_indices = @transform_1, window_bounds = array<i64: 2, 8, 128>}, {pipeline_mode = #tpu.pipeline_mode<synchronous>, transform_indices = @transform_2, window_bounds = array<i64: 128, 128>}, {pipeline_mode = #tpu.pipeline_mode<synchronous>, transform_indices = @transform_3, window_bounds = array<i64: 1, 128>}, {transform_indices = @transform_4, window_bounds = array<i64: 1, 2, 8>}]} {
    %c0 = arith.constant 0 : index
    %c0_0 = arith.constant 0 : index
    %c0_1 = arith.constant 0 : index
    %0 = vector.load %arg2[%c0, %c0_0, %c0_1] : memref<2x8x128xbf16, #tpu.memory_space<vmem>>, vector<2x8x128xbf16>
    %1 = vector.shape_cast %0 : vector<2x8x128xbf16> to vector<16x128xbf16>
    %c0_2 = arith.constant 0 : index
    %c0_3 = arith.constant 0 : index
    %2 = vector.load %arg3[%c0_2, %c0_3] : memref<128x128xbf16, #tpu.memory_space<vmem>>, vector<128x128xbf16>
    %cst = arith.constant dense<0.000000e+00> : vector<16x128xf32>
    %3 = tpu.matmul %1, %2, %cst {dimension_numbers = #tpu.dot_dimension_numbers<[1], [0], [0], [1], [0, 0, 1, 1], [], []>} : vector<16x128xbf16>, vector<128x128xbf16>, vector<16x128xf32> -> vector<16x128xf32>
    %4 = vector.shape_cast %3 : vector<16x128xf32> to vector<2x8x128xf32>
    %c0_4 = arith.constant 0 : index
    %c0_5 = arith.constant 0 : index
    %c0_6 = arith.constant 0 : index
    %5 = vector.load %arg1[%c0_4, %c0_5, %c0_6] : memref<1x2x128xf32, #tpu.memory_space<vmem>>, vector<1x2x128xf32>
    %6 = vector.shape_cast %5 : vector<1x2x128xf32> to vector<2x128xf32>
    %7 = vector.shape_cast %6 : vector<2x128xf32> to vector<2x1x128xf32>
    %8 = vector.broadcast %7 : vector<2x1x128xf32> to vector<2x8x128xf32>
    %9 = arith.addf %4, %8 : vector<2x8x128xf32>
    %c0_7 = arith.constant 0 : index
    %c0_8 = arith.constant 0 : index
    %10 = vector.load %arg4[%c0_7, %c0_8] : memref<1x128xf32, #tpu.memory_space<vmem>>, vector<1x128xf32>
    %11 = arith.truncf %9 : vector<2x8x128xf32> to vector<2x8x128xbf16>
    %12 = math.tanh %11 : vector<2x8x128xbf16>
    %13 = arith.extf %12 : vector<2x8x128xbf16> to vector<2x8x128xf32>
    %14 = vector.shape_cast %10 : vector<1x128xf32> to vector<1x1x128xf32>
    %15 = vector.broadcast %14 : vector<1x1x128xf32> to vector<2x8x128xf32>
    %16 = arith.mulf %13, %15 : vector<2x8x128xf32>
    %cst_9 = arith.constant dense<0.000000e+00> : vector<2x8xf32>
    %17 = vector.multi_reduction <add>, %16, %cst_9 [2] : vector<2x8x128xf32> to vector<2x8xf32>
    %cst_10 = arith.constant dense<0xFF800000> : vector<2xf32>
    %18 = vector.multi_reduction <maximumf>, %17, %cst_10 [1] : vector<2x8xf32> to vector<2xf32>
    %19 = vector.shape_cast %18 : vector<2xf32> to vector<2x1xf32>
    %20 = vector.broadcast %19 : vector<2x1xf32> to vector<2x8xf32>
    %21 = arith.subf %17, %20 : vector<2x8xf32>
    %22 = math.exp %21 : vector<2x8xf32>
    %cst_11 = arith.constant dense<0.000000e+00> : vector<2xf32>
    %23 = vector.multi_reduction <add>, %22, %cst_11 [1] : vector<2x8xf32> to vector<2xf32>
    %24 = vector.shape_cast %23 : vector<2xf32> to vector<2x1xf32>
    %25 = vector.broadcast %24 : vector<2x1xf32> to vector<2x8xf32>
    %26 = arith.divf %22, %25 : vector<2x8xf32>
    %c0_12 = arith.constant 0 : index
    %c0_13 = arith.constant 0 : index
    %c0_14 = arith.constant 0 : index
    %27 = vector.load %arg5[%c0_12, %c0_13, %c0_14] : memref<1x2x8xf32, #tpu.memory_space<vmem>>, vector<1x2x8xf32>
    %28 = vector.shape_cast %27 : vector<1x2x8xf32> to vector<2x8xf32>
    %29 = vector.shape_cast %26 : vector<2x8xf32> to vector<1x2x8xf32>
    tpu.vector_store %arg5[%c0_12, %c0_13, %c0_14], %29 {strides = array<i32>} : memref<1x2x8xf32, #tpu.memory_space<vmem>>, vector<1x2x8xf32>,
    return
  }
  func.func @transform_0(%arg0: i32) -> (i32, i32, i32) {
    %c0_i32 = arith.constant 0 : i32
    %c0_i32_0 = arith.constant 0 : i32
    %c0_i32_1 = arith.constant 0 : i32
    return %arg0, %c0_i32, %c0_i32_0 : i32, i32, i32
  }
  func.func @transform_1(%arg0: i32) -> (i32, i32, i32) {
    %c0_i32 = arith.constant 0 : i32
    %c0_i32_0 = arith.constant 0 : i32
    %c0_i32_1 = arith.constant 0 : i32
    return %arg0, %c0_i32, %c0_i32_0 : i32, i32, i32
  }
  func.func @transform_2(%arg0: i32) -> (i32, i32) {
    %c0_i32 = arith.constant 0 : i32
    %c0_i32_0 = arith.constant 0 : i32
    %c0_i32_1 = arith.constant 0 : i32
    return %c0_i32, %c0_i32_0 : i32, i32
  }
  func.func @transform_3(%arg0: i32) -> (i32, i32) {
    %c0_i32 = arith.constant 0 : i32
    %c0_i32_0 = arith.constant 0 : i32
    %c0_i32_1 = arith.constant 0 : i32
    return %c0_i32, %c0_i32_0 : i32, i32
  }
  func.func @transform_4(%arg0: i32) -> (i32, i32, i32) {
    %c0_i32 = arith.constant 0 : i32
    %c0_i32_0 = arith.constant 0 : i32
    %c0_i32_1 = arith.constant 0 : i32
    return %arg0, %c0_i32, %c0_i32_0 : i32, i32, i32
  }
}

</mosaic_0001>

<bundles_post_ra>
// kernel: tpu_custom_call.1
= control target key start
LH: loop header
LB: loop body
LE: loop exit
PB: predicated region body
PF: predicated region fallthrough
CT: control target
= control target key end

     0   :  { %9 = vsyncpa [#allocation3], 0  ;;  %s554_s0 = inlined_call_operand.hbm [shape: f32[1,2,128], index: 0, kind: input, shape index: {}]   ;;  %s555_s1 = inlined_call_operand.hbm [shape: bf16[2,8,128], index: 1, kind: input, shape index: {}]   ;;  %s556_s2 = inlined_call_operand.hbm [shape: bf16[128,128], index: 2, kind: input, shape index: {}]   ;;  %s557_s3 = inlined_call_operand.vmem [shape: f32[1,128], index: 3, kind: input, shape index: {}]   ;;  %s558_s4 = inlined_call_operand.hbm [shape: f32[1,2,8], index: 4, kind: output, shape index: {}]  }
   0x1   :  { %10 = vsyncpa [#allocation6], 0 }
   0x2   :  { %11 = vsyncpa [#allocation4], 0  ;;  %s492_s15 = smov [#allocation5]  }
   0x3   :  { %s27_s16 = sshll.u32 %s492_s15, 4  ;;  %s28_s16 = int_to_ptr.vmem [resolvable:$true] %s27_s16 }
   0x4   :  { %s414_s17 = scalar_lea.vmem %s28_s16, 128  ;;  %p419_p1 = scmp.lt.s32.totalorder %s28_s16, %s28_s16 }
   0x5   :  { %p415_p0 = scmp.ne.s32.totalorder %s28_s16, %s414_s17  ;;  %p420_p2 = scmp.lt.s32.totalorder %s414_s17, %s414_s17 }
   0x7   :  { %p421_p3 = por %p420_p2, %p419_p1 }
   0x9   :  { %p422_p4 = pnand %p421_p3, %p415_p0 }
   0xb   :  { %425 = shalt.err (!%p422_p4)
}
   0xc   :  { %s493_s18 = smov 64   ;;  %s494_s19 = smov 4  }
   0xd   :  { %33 = dma.hbm_to_vmem [thread:$0]  %s555_s1, 128, %s28_s16, [#allocation6], %s493_s18, %s493_s18, %s494_s19  }
   0xe   :  { %s495_s22 = smov [#allocation2]   ;;  %s496_s24 = smov [#allocation7]  }
   0xf   :  { %s18_s23 = sshll.u32 %s495_s22, 4  ;;  %s39_s25 = sshll.u32 %s496_s24, 4  ;;  %s19_s23 = int_to_ptr.vmem [resolvable:$true] %s18_s23  ;;  %s40_s25 = int_to_ptr.vmem [resolvable:$true] %s39_s25 }
  0x10   :  { %s434_s26 = scalar_lea.vmem %s19_s23, 32  ;;  %p439_p6 = scmp.lt.s32.totalorder %s19_s23, %s19_s23 }
  0x11   :  { %p435_p5 = scmp.ne.s32.totalorder %s19_s23, %s434_s26  ;;  %p440_p7 = scmp.lt.s32.totalorder %s434_s26, %s434_s26 }
  0x13   :  { %p441_p8 = por %p440_p7, %p439_p6 }
  0x15   :  { %p442_p9 = pnand %p441_p8, %p435_p5 }
  0x17   :  { %445 = shalt.err (!%p442_p9)
}
  0x18   :  { %21 = dma.hbm_to_vmem [thread:$0]  %s554_s0, 32, %s19_s23, [#allocation3]  }
  0x19   :  { %s454_s29 = scalar_lea.vmem %s40_s25, 1024  ;;  %p459_p11 = scmp.lt.s32.totalorder %s40_s25, %s40_s25 }
  0x1a   :  { %p455_p10 = scmp.ne.s32.totalorder %s40_s25, %s454_s29  ;;  %p460_p12 = scmp.lt.s32.totalorder %s454_s29, %s454_s29 }
  0x1c   :  { %p461_p13 = por %p460_p12, %p459_p11 }
  0x1e   :  { %p462_p0 = pnand %p461_p13, %p455_p10 }
  0x20   :  { %465 = shalt.err (!%p462_p0)
}
  0x21   :  { %45 = dma.hbm_to_vmem [thread:$0]  %s556_s2, 1024, %s40_s25, [#allocation6], %s493_s18, %s493_s18, %s494_s19  }
  0x22   :  { %486 = dma.done.wait [#allocation3], 32  }
  0x23   :  { %487 = vsyncadd [#allocation3], 4294967264 }
  0x24   :  { %488 = dma.done.wait [#allocation6], 1152  }
  0x25   :  { %489 = vsyncadd [#allocation6], 4294966144  ;;  %v497_v0 = vmov 0.0   ;;  %vm498_vm0 = vmmov 0   ;;  %v385_v1 = vld [vmem:[#allocation7 + $0x38] sm:$0xff]   ;;  %v386_v2 = vld [vmem:[#allocation7 + $0x30] sm:$0xff]   ;;  %v184_v12 = vlaneseq }
  0x26   :  { %353 = vmatprep.subr.bf16.mxu0 %v497_v0  ;;  %369 = vmatprep.mubr.msk.bf16.mxu0 %vm498_vm0, %v497_v0  ;;  %v387_v3 = vld [vmem:[#allocation7 + $0x28] sm:$0xff]   ;;  %v388_v4 = vld [vmem:[#allocation7 + $0x20] sm:$0xff]   ;;  %v389_v5 = vld [vmem:[#allocation7 + $0x18] sm:$0xff]   ;;  %v499_v10 = vmov 1966171168   ;;  %vm238_vm1 = vcmask 1041409  }
  0x27   :  { %354 = vmatpush3.bf16.msra.mxu0 %v385_v1  ;;  %v390_v6 = vld [vmem:[#allocation7 + $0x10] sm:$0xff]   ;;  %v391_v7 = vld [vmem:[#allocation7 + $0x8] sm:$0xff]   ;;  %v392_v8 = vld [vmem:[#allocation7] sm:$0xff]   ;;  %v182_v11 = vunpack.c.l.s4 %v499_v10  ;;  %v536_v14 = vshrl.u32 %v184_v12, 7  ;;  %v229_v38 = vand.u32 127, %v184_v12  ;;  %vm241_vm2 = vcmask 58368  }
  0x28   :  { %355 = vmatprep.subr.bf16.mxu0 %v497_v0  ;;  %v393_v9 = vld [vmem:[#allocation5] sm:$0xff]   ;;  %v342_v16 = vld.sshfl [vmem:[#allocation2] sm:$0x11 pattern:$0x75316420]  ;;  %v500_v46 = vmov 0  }
  0x29   :  { %v183_v13 = vunpack.c.0.s8 %v182_v11  ;;  %v197_v18 = vsub.s32 0, %v536_v14  ;;  %v180_v19 = vcombine.high %v342_v16, %v342_v16  ;;  %v343_v32 = vld [vmem:[%s557_s3] ss:$0 sm:$0xff]  ;;  %v232_v40 = vsub.s32 %v229_v38, %v536_v14  ;;  %384 = vset.pattern.permute.xlu0 %v500_v46  ;;  %383 = vset.pattern.permute.xlu1 %v500_v46  ;;  %s501_s3 = smov [#allocation8]  }
  0x2a   :  { %v252_v47 = vsub.s32 1, %v536_v14  ;;  %s323_s5 = sshll.u32 %s501_s3, 4  ;;  %s324_s5 = int_to_ptr.vmem [resolvable:$true] %s323_s5 }
  0x2b   :  { %356 = vmatpush3.bf16.msra.mxu0 %v386_v2  ;;  %v186_v15 = vsub.s32 %v183_v13, %v536_v14  ;;  %s466_s6 = scalar_lea.vmem %s324_s5, 32  ;;  %p471_p2 = scmp.lt.s32.totalorder %s324_s5, %s324_s5 }
  0x2c   :  { %357 = vmatprep.subr.bf16.mxu0 %v497_v0  ;;  %p467_p1 = scmp.ne.s32.totalorder %s324_s5, %s466_s6  ;;  %p472_p3 = scmp.lt.s32.totalorder %s466_s6, %s466_s6 }
  0x2d   :  { %v187_v17 = vrot.slane %v342_v16, %v186_v15  ;;  %v194_v21 = vrot.slane %v180_v19, %v186_v15 }
  0x2e   :  { %p473_p4 = por %p472_p3, %p471_p2 }
  0x2f   :  { %358 = vmatpush3.bf16.msra.mxu0 %v387_v3  ;;  %v198_v20 = vrot.slane %v187_v17, %v197_v18  ;;  %v202_v24 = vrot.slane %v194_v21, %v197_v18 }
  0x30   :  { %359 = vmatprep.subr.bf16.mxu0 %v497_v0  ;;  %p474_p5 = pnand %p473_p4, %p467_p1 }
  0x33   :  { %360 = vmatpush3.bf16.msra.mxu0 %v388_v4 }
  0x34   :  { %361 = vmatprep.subr.bf16.mxu0 %v497_v0 }
  0x37   :  { %362 = vmatpush3.bf16.msra.mxu0 %v389_v5 }
  0x38   :  { %363 = vmatprep.subr.bf16.mxu0 %v497_v0 }
  0x3b   :  { %364 = vmatpush3.bf16.msra.mxu0 %v390_v6 }
  0x3c   :  { %365 = vmatprep.subr.bf16.mxu0 %v497_v0 }
  0x3f   :  { %366 = vmatpush3.bf16.msra.mxu0 %v391_v7 }
  0x40   :  { %367 = vmatprep.subr.bf16.mxu0 %v497_v0 }
  0x43   :  { %368 = vmatpush3.bf16.msra.mxu0 %v392_v8 }
  0x46   :  { %370 = vmatmul.mubr.bf16.vlgmr.msra.gmra.mxu0 %v393_v9 }
 0x106   :  { %v164_v22 = vpop.f32.mrf.mxu0 }
 0x107   :  { %v205_v23 = vadd.f32 %v198_v20, %v164_v22 }
 0x108   :  { %v371_v25 = vpop.f32.mrf.mxu0 }
 0x109   :  { %v208_v26 = vpack.c.bf16 %v205_v23, %v205_v23 }
 0x10a   :  { %v167_v27 = vpop.f32.mrf.mxu0 }
 0x10b   :  { %394 = vtanh.bf16 %v208_v26  ;;  %v206_v28 = vadd.f32 %v202_v24, %v167_v27 }
 0x10c   :  { %v372_v29 = vpop.f32.mrf.mxu0 }
 0x10d   :  { %v209_v30 = vpack.c.bf16 %v206_v28, %v206_v28 }
 0x10f   :  { %396 = vtanh.bf16 %v209_v30 }
 0x119   :  { %v395_v31 = vpop.eup %394 }
 0x11a   :  { %v212_v33 = vunpack.c.l.bf16 %v395_v31 }
 0x11c   :  { %v220_v34 = vmul.f32 %v343_v32, %v212_v33 }
 0x11d   :  { %v397_v35 = vpop.eup %396 }
 0x11e   :  { %222 = vadd.xlane.f32.xlu0 %v220_v34  ;;  %v213_v36 = vunpack.c.l.bf16 %v397_v35 }
 0x120   :  { %v221_v37 = vmul.f32 %v343_v32, %v213_v36 }
 0x122   :  { %224 = vadd.xlane.f32.xlu0 %v221_v37 }
 0x1a7   :  { %v223_v39 = vpop.xlane.xlu0 %222 }
 0x1a8   :  { %v233_v42 = vrot.slane %v223_v39, %v232_v40 }
 0x1ab   :  { %v225_v41 = vpop.xlane.xlu0 %224 }
 0x1ac   :  { %v237_v43 = vrot.slane %v225_v41, %v232_v40 }
 0x1ae   :  { %v239_v44 = vsel %vm238_vm1, %v237_v43, %v233_v42 }
 0x1af   :  { %v242_v45 = vsel %vm241_vm2, %v239_v44, -inf }
 0x1b0   :  { %243 = vmax.xlane.f32.xlu1 %v242_v45 }
 0x239   :  { %v244_v48 = vpop.xlane.xlu1 %243 }
 0x23a   :  { %v249_v49 = vrot.slane %v244_v48, %v197_v18  ;;  %v253_v50 = vrot.slane %v244_v48, %v252_v47 }
 0x23c   :  { %v256_v51 = vsub.f32 %v223_v39, %v249_v49  ;;  %v257_v52 = vsub.f32 %v225_v41, %v253_v50 }
 0x23e   :  { %v258_v53 = vmul.f32 1.442695, %v256_v51  ;;  %v260_v54 = vmul.f32 1.442695, %v257_v52 }
 0x240   :  { %398 = vpow2.f32 %v258_v53 }
 0x241   :  { %400 = vpow2.f32 %v260_v54 }
 0x24d   :  { %v399_v55 = vpop.eup %398 }
 0x24e   :  { %v401_v56 = vpop.eup %400  ;;  %265 = vperm.xlu1 %383, %v399_v55  }
 0x24f   :  { %268 = vperm.xlu0 %384, %v401_v56  }
 0x2c9   :  { %v266_v57 = vpop.permute.xlu1 %265 }
 0x2ca   :  { %v269_v58 = vpop.permute.xlu0 %268  ;;  %v273_v59 = vrot.slane %v266_v57, %v232_v40 }
 0x2cb   :  { %v277_v60 = vrot.slane %v269_v58, %v232_v40 }
 0x2cd   :  { %v278_v61 = vsel %vm238_vm1, %v277_v60, %v273_v59 }
 0x2ce   :  { %v280_v62 = vsel %vm241_vm2, %v278_v61, 0.0 }
 0x2cf   :  { %281 = vadd.xlane.f32.xlu1 %v280_v62 }
 0x358   :  { %v282_v63 = vpop.xlane.xlu1 %281 }
 0x359   :  { %v287_v0 = vrot.slane %v282_v63, %v197_v18  ;;  %v291_v1 = vrot.slane %v282_v63, %v252_v47 }
 0x35b   :  { %402 = vrcp.f32 %v287_v0 }
 0x35c   :  { %404 = vrcp.f32 %v291_v1 }
 0x368   :  { %v403_v2 = vpop.eup %402 }
 0x369   :  { %v295_v3 = vmul.f32 %v403_v2, %v399_v55  ;;  %v405_v4 = vpop.eup %404 }
 0x36a   :  { %v297_v5 = vmul.f32 %v405_v4, %v401_v56 }
 0x36b   :  { %301 = vperm.xlu0 %384, %v295_v3  }
 0x36f   :  { %304 = vperm.xlu0 %384, %v297_v5  }
 0x3e6   :  { %v302_v6 = vpop.permute.xlu0 %301 }
 0x3e7   :  { %v309_v8 = vrot.slane %v302_v6, %v232_v40 }
 0x3ea   :  { %v305_v7 = vpop.permute.xlu0 %304 }
 0x3eb   :  { %v313_v9 = vrot.slane %v305_v7, %v232_v40 }
 0x3ed   :  { %v314_v10 = vsel %vm238_vm1, %v313_v9, %v309_v8 }
 0x3ee   :  { %316 = vst.msk [vmem:[#allocation8] sm:$0x3] %vm241_vm2, %v314_v10 }
 0x3ef   :  { %477 = shalt.err (!%p474_p5)
}
 0x3f0   :  { %326 = dma.vmem_to_hbm [thread:$0]  %s324_s5, 32, %s558_s4, [#allocation4]  }
 0x3f1   :  { %490 = dma.done.wait [#allocation4], 32  }
 0x3f2   :  { %491 = vsyncadd [#allocation4], 4294967264 }
 0x3f3   :  { %330 = vsyncpa [#allocation3], 1 }
 0x3f4   :  { %331 = vsyncpa [#allocation6], 1 }
 0x3f5   :  { %332 = vsyncpa [#allocation4], 1 }

// kernel: tpu_custom_call.1
= control target key start
LH: loop header
LB: loop body
LE: loop exit
PB: predicated region body
PF: predicated region fallthrough
CT: control target
= control target key end

     0   :  { %9 = vsyncpa [#allocation3], 0  ;;  %s554_s0 = inlined_call_operand.hbm [shape: f32[1,2,128], index: 0, kind: input, shape index: {}]   ;;  %s555_s1 = inlined_call_operand.hbm [shape: bf16[2,8,128], index: 1, kind: input, shape index: {}]   ;;  %s556_s2 = inlined_call_operand.hbm [shape: bf16[128,128], index: 2, kind: input, shape index: {}]   ;;  %s557_s3 = inlined_call_operand.vmem [shape: f32[1,128], index: 3, kind: input, shape index: {}]   ;;  %s558_s4 = inlined_call_operand.hbm [shape: f32[1,2,8], index: 4, kind: output, shape index: {}]  }
   0x1   :  { %10 = vsyncpa [#allocation6], 0 }
   0x2   :  { %11 = vsyncpa [#allocation4], 0  ;;  %s492_s15 = smov [#allocation5]  }
   0x3   :  { %s27_s16 = sshll.u32 %s492_s15, 4  ;;  %s28_s16 = int_to_ptr.vmem [resolvable:$true] %s27_s16 }
   0x4   :  { %s414_s17 = scalar_lea.vmem %s28_s16, 128  ;;  %p419_p1 = scmp.lt.s32.totalorder %s28_s16, %s28_s16 }
   0x5   :  { %p415_p0 = scmp.ne.s32.totalorder %s28_s16, %s414_s17  ;;  %p420_p2 = scmp.lt.s32.totalorder %s414_s17, %s414_s17 }
   0x7   :  { %p421_p3 = por %p420_p2, %p419_p1 }
   0x9   :  { %p422_p4 = pnand %p421_p3, %p415_p0 }
   0xb   :  { %425 = shalt.err (!%p422_p4)
}
   0xc   :  { %s493_s18 = smov 64   ;;  %s494_s19 = smov 4  }
   0xd   :  { %33 = dma.hbm_to_vmem [thread:$0]  %s555_s1, 128, %s28_s16, [#allocation6], %s493_s18, %s493_s18, %s494_s19  }
   0xe   :  { %s495_s22 = smov [#allocation2]   ;;  %s496_s24 = smov [#allocation7]  }
   0xf   :  { %s18_s23 = sshll.u32 %s495_s22, 4  ;;  %s39_s25 = sshll.u32 %s496_s24, 4  ;;  %s19_s23 = int_to_ptr.vmem [resolvable:$true] %s18_s23  ;;  %s40_s25 = int_to_ptr.vmem [resolvable:$true] %s39_s25 }
  0x10   :  { %s434_s26 = scalar_lea.vmem %s19_s23, 32  ;;  %p439_p6 = scmp.lt.s32.totalorder %s19_s23, %s19_s23 }
  0x11   :  { %p435_p5 = scmp.ne.s32.totalorder %s19_s23, %s434_s26  ;;  %p440_p7 = scmp.lt.s32.totalorder %s434_s26, %s434_s26 }
  0x13   :  { %p441_p8 = por %p440_p7, %p439_p6 }
  0x15   :  { %p442_p9 = pnand %p441_p8, %p435_p5 }
  0x17   :  { %445 = shalt.err (!%p442_p9)
}
  0x18   :  { %21 = dma.hbm_to_vmem [thread:$0]  %s554_s0, 32, %s19_s23, [#allocation3]  }
  0x19   :  { %s454_s29 = scalar_lea.vmem %s40_s25, 1024  ;;  %p459_p11 = scmp.lt.s32.totalorder %s40_s25, %s40_s25 }
  0x1a   :  { %p455_p10 = scmp.ne.s32.totalorder %s40_s25, %s454_s29  ;;  %p460_p12 = scmp.lt.s32.totalorder %s454_s29, %s454_s29 }
  0x1c   :  { %p461_p13 = por %p460_p12, %p459_p11 }
  0x1e   :  { %p462_p0 = pnand %p461_p13, %p455_p10 }
  0x20   :  { %465 = shalt.err (!%p462_p0)
}
  0x21   :  { %45 = dma.hbm_to_vmem [thread:$0]  %s556_s2, 1024, %s40_s25, [#allocation6], %s493_s18, %s493_s18, %s494_s19  }
  0x22   :  { %486 = dma.done.wait [#allocation3], 32  }
  0x23   :  { %487 = vsyncadd [#allocation3], 4294967264 }
  0x24   :  { %488 = dma.done.wait [#allocation6], 1152  }
  0x25   :  { %489 = vsyncadd [#allocation6], 4294966144  ;;  %v497_v0 = vmov 0.0   ;;  %vm498_vm0 = vmmov 0   ;;  %v385_v1 = vld [vmem:[#allocation7 + $0x38] sm:$0xff]   ;;  %v386_v2 = vld [vmem:[#allocation7 + $0x30] sm:$0xff]   ;;  %v184_v12 = vlaneseq }
  0x26   :  { %353 = vmatprep.subr.bf16.mxu0 %v497_v0  ;;  %369 = vmatprep.mubr.msk.bf16.mxu0 %vm498_vm0, %v497_v0  ;;  %v387_v3 = vld [vmem:[#allocation7 + $0x28] sm:$0xff]   ;;  %v388_v4 = vld [vmem:[#allocation7 + $0x20] sm:$0xff]   ;;  %v389_v5 = vld [vmem:[#allocation7 + $0x18] sm:$0xff]   ;;  %v499_v10 = vmov 1966171168   ;;  %vm238_vm1 = vcmask 1041409  }
  0x27   :  { %354 = vmatpush3.bf16.msra.mxu0 %v385_v1  ;;  %v390_v6 = vld [vmem:[#allocation7 + $0x10] sm:$0xff]   ;;  %v391_v7 = vld [vmem:[#allocation7 + $0x8] sm:$0xff]   ;;  %v392_v8 = vld [vmem:[#allocation7] sm:$0xff]   ;;  %v182_v11 = vunpack.c.l.s4 %v499_v10  ;;  %v536_v14 = vshrl.u32 %v184_v12, 7  ;;  %v229_v38 = vand.u32 127, %v184_v12  ;;  %vm241_vm2 = vcmask 58368  }
  0x28   :  { %355 = vmatprep.subr.bf16.mxu0 %v497_v0  ;;  %v393_v9 = vld [vmem:[#allocation5] sm:$0xff]   ;;  %v342_v16 = vld.sshfl [vmem:[#allocation2] sm:$0x11 pattern:$0x75316420]  ;;  %v500_v46 = vmov 0  }
  0x29   :  { %v183_v13 = vunpack.c.0.s8 %v182_v11  ;;  %v197_v18 = vsub.s32 0, %v536_v14  ;;  %v180_v19 = vcombine.high %v342_v16, %v342_v16  ;;  %v343_v32 = vld [vmem:[%s557_s3] ss:$0 sm:$0xff]  ;;  %v232_v40 = vsub.s32 %v229_v38, %v536_v14  ;;  %384 = vset.pattern.permute.xlu0 %v500_v46  ;;  %383 = vset.pattern.permute.xlu1 %v500_v46  ;;  %s501_s3 = smov [#allocation8]  }
  0x2a   :  { %v252_v47 = vsub.s32 1, %v536_v14  ;;  %s323_s5 = sshll.u32 %s501_s3, 4  ;;  %s324_s5 = int_to_ptr.vmem [resolvable:$true] %s323_s5 }
  0x2b   :  { %356 = vmatpush3.bf16.msra.mxu0 %v386_v2  ;;  %v186_v15 = vsub.s32 %v183_v13, %v536_v14  ;;  %s466_s6 = scalar_lea.vmem %s324_s5, 32  ;;  %p471_p2 = scmp.lt.s32.totalorder %s324_s5, %s324_s5 }
  0x2c   :  { %357 = vmatprep.subr.bf16.mxu0 %v497_v0  ;;  %p467_p1 = scmp.ne.s32.totalorder %s324_s5, %s466_s6  ;;  %p472_p3 = scmp.lt.s32.totalorder %s466_s6, %s466_s6 }
  0x2d   :  { %v187_v17 = vrot.slane %v342_v16, %v186_v15  ;;  %v194_v21 = vrot.slane %v180_v19, %v186_v15 }
  0x2e   :  { %p473_p4 = por %p472_p3, %p471_p2 }
  0x2f   :  { %358 = vmatpush3.bf16.msra.mxu0 %v387_v3  ;;  %v198_v20 = vrot.slane %v187_v17, %v197_v18  ;;  %v202_v24 = vrot.slane %v194_v21, %v197_v18 }
  0x30   :  { %359 = vmatprep.subr.bf16.mxu0 %v497_v0  ;;  %p474_p5 = pnand %p473_p4, %p467_p1 }
  0x33   :  { %360 = vmatpush3.bf16.msra.mxu0 %v388_v4 }
  0x34   :  { %361 = vmatprep.subr.bf16.mxu0 %v497_v0 }
  0x37   :  { %362 = vmatpush3.bf16.msra.mxu0 %v389_v5 }
  0x38   :  { %363 = vmatprep.subr.bf16.mxu0 %v497_v0 }
  0x3b   :  { %364 = vmatpush3.bf16.msra.mxu0 %v390_v6 }
  0x3c   :  { %365 = vmatprep.subr.bf16.mxu0 %v497_v0 }
  0x3f   :  { %366 = vmatpush3.bf16.msra.mxu0 %v391_v7 }
  0x40   :  { %367 = vmatprep.subr.bf16.mxu0 %v497_v0 }
  0x43   :  { %368 = vmatpush3.bf16.msra.mxu0 %v392_v8 }
  0x46   :  { %370 = vmatmul.mubr.bf16.vlgmr.msra.gmra.mxu0 %v393_v9 }
 0x106   :  { %v164_v22 = vpop.f32.mrf.mxu0 }
 0x107   :  { %v205_v23 = vadd.f32 %v198_v20, %v164_v22 }
 0x108   :  { %v371_v25 = vpop.f32.mrf.mxu0 }
 0x109   :  { %v208_v26 = vpack.c.bf16 %v205_v23, %v205_v23 }
 0x10a   :  { %v167_v27 = vpop.f32.mrf.mxu0 }
 0x10b   :  { %394 = vtanh.bf16 %v208_v26  ;;  %v206_v28 = vadd.f32 %v202_v24, %v167_v27 }
 0x10c   :  { %v372_v29 = vpop.f32.mrf.mxu0 }
 0x10d   :  { %v209_v30 = vpack.c.bf16 %v206_v28, %v206_v28 }
 0x10f   :  { %396 = vtanh.bf16 %v209_v30 }
 0x119   :  { %v395_v31 = vpop.eup %394 }
 0x11a   :  { %v212_v33 = vunpack.c.l.bf16 %v395_v31 }
 0x11c   :  { %v220_v34 = vmul.f32 %v343_v32, %v212_v33 }
 0x11d   :  { %v397_v35 = vpop.eup %396 }
 0x11e   :  { %222 = vadd.xlane.f32.xlu0 %v220_v34  ;;  %v213_v36 = vunpack.c.l.bf16 %v397_v35 }
 0x120   :  { %v221_v37 = vmul.f32 %v343_v32, %v213_v36 }
 0x122   :  { %224 = vadd.xlane.f32.xlu0 %v221_v37 }
 0x1a7   :  { %v223_v39 = vpop.xlane.xlu0 %222 }
 0x1a8   :  { %v233_v42 = vrot.slane %v223_v39, %v232_v40 }
 0x1ab   :  { %v225_v41 = vpop.xlane.xlu0 %224 }
 0x1ac   :  { %v237_v43 = vrot.slane %v225_v41, %v232_v40 }
 0x1ae   :  { %v239_v44 = vsel %vm238_vm1, %v237_v43, %v233_v42 }
 0x1af   :  { %v242_v45 = vsel %vm241_vm2, %v239_v44, -inf }
 0x1b0   :  { %243 = vmax.xlane.f32.xlu1 %v242_v45 }
 0x239   :  { %v244_v48 = vpop.xlane.xlu1 %243 }
 0x23a   :  { %v249_v49 = vrot.slane %v244_v48, %v197_v18  ;;  %v253_v50 = vrot.slane %v244_v48, %v252_v47 }
 0x23c   :  { %v256_v51 = vsub.f32 %v223_v39, %v249_v49  ;;  %v257_v52 = vsub.f32 %v225_v41, %v253_v50 }
 0x23e   :  { %v258_v53 = vmul.f32 1.442695, %v256_v51  ;;  %v260_v54 = vmul.f32 1.442695, %v257_v52 }
 0x240   :  { %398 = vpow2.f32 %v258_v53 }
 0x241   :  { %400 = vpow2.f32 %v260_v54 }
 0x24d   :  { %v399_v55 = vpop.eup %398 }
 0x24e   :  { %v401_v56 = vpop.eup %400  ;;  %265 = vperm.xlu1 %383, %v399_v55  }
 0x24f   :  { %268 = vperm.xlu0 %384, %v401_v56  }
 0x2c9   :  { %v266_v57 = vpop.permute.xlu1 %265 }
 0x2ca   :  { %v269_v58 = vpop.permute.xlu0 %268  ;;  %v273_v59 = vrot.slane %v266_v57, %v232_v40 }
 0x2cb   :  { %v277_v60 = vrot.slane %v269_v58, %v232_v40 }
 0x2cd   :  { %v278_v61 = vsel %vm238_vm1, %v277_v60, %v273_v59 }
 0x2ce   :  { %v280_v62 = vsel %vm241_vm2, %v278_v61, 0.0 }
 0x2cf   :  { %281 = vadd.xlane.f32.xlu1 %v280_v62 }
 0x358   :  { %v282_v63 = vpop.xlane.xlu1 %281 }
 0x359   :  { %v287_v0 = vrot.slane %v282_v63, %v197_v18  ;;  %v291_v1 = vrot.slane %v282_v63, %v252_v47 }
 0x35b   :  { %402 = vrcp.f32 %v287_v0 }
 0x35c   :  { %404 = vrcp.f32 %v291_v1 }
 0x368   :  { %v403_v2 = vpop.eup %402 }
 0x369   :  { %v295_v3 = vmul.f32 %v403_v2, %v399_v55  ;;  %v405_v4 = vpop.eup %404 }
 0x36a   :  { %v297_v5 = vmul.f32 %v405_v4, %v401_v56 }
 0x36b   :  { %301 = vperm.xlu0 %384, %v295_v3  }
 0x36f   :  { %304 = vperm.xlu0 %384, %v297_v5  }
 0x3e6   :  { %v302_v6 = vpop.permute.xlu0 %301 }
 0x3e7   :  { %v309_v8 = vrot.slane %v302_v6, %v232_v40 }
 0x3ea   :  { %v305_v7 = vpop.permute.xlu0 %304 }
 0x3eb   :  { %v313_v9 = vrot.slane %v305_v7, %v232_v40 }
 0x3ed   :  { %v314_v10 = vsel %vm238_vm1, %v313_v9, %v309_v8 }
 0x3ee   :  { %316 = vst.msk [vmem:[#allocation8] sm:$0x3] %vm241_vm2, %v314_v10 }
 0x3ef   :  { %477 = shalt.err (!%p474_p5)
}
 0x3f0   :  { %326 = dma.vmem_to_hbm [thread:$0]  %s324_s5, 32, %s558_s4, [#allocation4]  }
 0x3f1   :  { %490 = dma.done.wait [#allocation4], 32  }
 0x3f2   :  { %491 = vsyncadd [#allocation4], 4294967264 }
 0x3f3   :  { %330 = vsyncpa [#allocation3], 1 }
 0x3f4   :  { %331 = vsyncpa [#allocation6], 1 }
 0x3f5   :  { %332 = vsyncpa [#allocation4], 1 }

</bundles_post_ra>
